<compile_context>
chip_gen: v7x
topology: tpu7x:2x2x1
jax: 0.10.0
libtpu: 0.0.40
codegen_flags: <defaults>
</compile_context>

<pallas_src>
import functools

import jax
import jax.numpy as jnp
from jax.experimental import pallas as pl
from jax.experimental.pallas import tpu as pltpu


# ---------------------------------------------------------------------------
# Helpers
# ---------------------------------------------------------------------------
def _round_up(x: int, m: int) -> int:
    return (x + m - 1) // m * m


def _pick_tile_div(total: int, unit: int, cap: int) -> int:
    """Largest divisor of `total` that is a multiple of `unit` and <= cap.

    `total` must already be a multiple of `unit`; always returns >= unit.
    """
    cap = max(unit, min(cap, total))
    t = (cap // unit) * unit
    while t > unit:
        if total % t == 0:
            return t
        t -= unit
    return unit


def _pad_x_rows(x_rows, Rp: int, Np: int):
    """Pad (R, N) heatmap rows to (Rp, Np).

    N padding uses -inf (beta > 0  ->  exp(beta*(-inf) - m) == 0, so padded
    positions contribute nothing); R padding uses 0 (rows are discarded, zeros
    keep the math NaN-free).
    """
    R, N = x_rows.shape
    if N != Np:
        x_rows = jnp.pad(x_rows, ((0, 0), (0, Np - N)),
                         constant_values=-jnp.inf)
    if R != Rp:
        x_rows = jnp.pad(x_rows, ((0, Rp - R), (0, 0)))
    return x_rows


def _finalize_reciprocal(s):
    # EUP approx reciprocal (separate issue slot from the VPU) + one Newton
    # step to restore ~f32 accuracy.  Only runs on a tiny (rows, 1) column.
    r = pl.reciprocal(s, approx=True)
    return r * (2.0 - s * r)


# ---------------------------------------------------------------------------
# Shared-grid fast path: rows = B*C, grid (N, D) identical across the batch.
# ---------------------------------------------------------------------------
def _shared_single_kernel(beta, d_out, x_ref, g_ref, o_ref):
    # x_ref: (tr, Np)   g_ref: (Np, D+1)   o_ref: (tr, D)
    x = x_ref[...].astype(jnp.float32) * jnp.float32(beta)
    m = jnp.max(x, axis=-1, keepdims=True)
    e = jnp.exp(x - m)
    acc = jnp.dot(e, g_ref[...].astype(jnp.float32),
                  preferred_element_type=jnp.float32)      # (tr, D+1)
    inv = _finalize_reciprocal(acc[:, d_out:d_out + 1])     # denom = ones col
    o_ref[...] = (acc[:, :d_out] * inv).astype(o_ref.dtype)


def _shared_online_kernel(beta, d_out, tn, grid_resident,
                          x_ref, g_ref, o_ref, m_sc, acc_sc):
    # x_ref: (tr, tn)   g_ref: (tn, D+1) or (Np, D+1) if resident
    # o_ref: (tr, D)    m_sc: (tr, 1)    acc_sc: (tr, D+1)
    n = pl.program_id(1)

    @pl.when(n == 0)
    def _():
        m_sc[...] = jnp.full_like(m_sc, -jnp.inf)
        acc_sc[...] = jnp.zeros_like(acc_sc)

    x = x_ref[...].astype(jnp.float32) * jnp.float32(beta)
    if grid_resident:
        g = g_ref[pl.ds(pl.multiple_of(n * tn, 128), tn), :]
    else:
        g = g_ref[...]

    m_new = jnp.maximum(m_sc[...], jnp.max(x, axis=-1, keepdims=True))
    alpha = jnp.exp(m_sc[...] - m_new)                       # (tr, 1)
    e = jnp.exp(x - m_new)                                   # (tr, tn)
    # Ones column of the grid carries the denominator through the same dot.
    acc_sc[...] = alpha * acc_sc[...] + jnp.dot(
        e, g.astype(jnp.float32), preferred_element_type=jnp.float32)
    m_sc[...] = m_new

    @pl.when(n == pl.num_programs(1) - 1)
    def _():
        acc = acc_sc[...]
        inv = _finalize_reciprocal(acc[:, d_out:d_out + 1])
        o_ref[...] = (acc[:, :d_out] * inv).astype(o_ref.dtype)


def _soft_argmax_shared(x_rows, grid2d, beta, B, C, N, D, out_dtype,
                        n_tile_target):
    R = B * C
    x_itemsize = jnp.dtype(x_rows.dtype).itemsize

    # ---- tile selection (pad-to-tile keeps the (8,128) constraint valid
    #      for any spatial size) -------------------------------------------
    if n_tile_target is None:
        # bf16 heatmaps: bigger N tiles at the same VMEM budget.
        n_tile_target = 4096 if x_itemsize <= 2 else 2048
    n_tile_target = max(128, (int(n_tile_target) // 128) * 128)
    Np = _round_up(N, 128)
    tn = _pick_tile_div(Np, 128, n_tile_target)

    Rp = _round_up(R, 8)
    r_cap = 512
    if Rp >= 16:
        # Keep >= 2 steps on the 'parallel' row axis so v7x's 2 TensorCores
        # both get work; harmless on v5e/v6e.
        r_cap = min(r_cap, max(8, (Rp // 2) // 8 * 8))
    tr = _pick_tile_div(Rp, 8, r_cap)

    # ---- host-side prep ---------------------------------------------------
    x_rows = _pad_x_rows(x_rows, Rp, Np)
    g_ext = jnp.concatenate(
        [grid2d.astype(jnp.float32), jnp.ones((N, 1), jnp.float32)], axis=-1)
    if Np != N:
        g_ext = jnp.pad(g_ext, ((0, Np - N), (0, 0)))        # zero rows: e==0
    De = D + 1

    n_steps = Np // tn
    # Keep the whole grid resident in VMEM (fetched once, constant index_map)
    # when its lane-padded footprint is small; stream (tn, De) blocks else.
    grid_resident = (Np * 128 * 4) <= (4 << 20)

    # ---- explicit VMEM budget (lane padding of last dims to 128 included) --
    g_rows = Np if (grid_resident or n_steps == 1) else tn
    est = (2 * tr * tn * x_itemsize        # x, double-buffered
           + 2 * g_rows * 128 * 4          # grid buffers (lane-padded)
           + 2 * tr * 128 * 4              # output buffers
           + 2 * tr * 128 * 4)             # m / acc scratch
    vmem_limit = int(min(max(est * 5 // 4 + (2 << 20), 32 << 20), 48 << 20))

    cost = pl.CostEstimate(
        flops=2 * R * N * De,
        transcendentals=R * N,
        bytes_accessed=x_itemsize * R * N + 4 * (N * De + R * D))

    if n_steps == 1:
        out = pl.pallas_call(
            functools.partial(_shared_single_kernel, beta, D),
            out_shape=jax.ShapeDtypeStruct((Rp, D), out_dtype),
            grid_spec=pltpu.PrefetchScalarGridSpec(
                num_scalar_prefetch=0,
                grid=(Rp // tr,),
                in_specs=[
                    pl.BlockSpec((tr, Np), lambda r: (r, 0)),
                    pl.BlockSpec((Np, De), lambda r: (0, 0)),   # resident
                ],
                out_specs=pl.BlockSpec((tr, D), lambda r: (r, 0)),
            ),
            compiler_params=pltpu.CompilerParams(
                dimension_semantics=("parallel",),
                vmem_limit_bytes=vmem_limit),
            cost_estimate=cost,
        )(x_rows, g_ext)
    else:
        if grid_resident:
            g_spec = pl.BlockSpec((Np, De), lambda r, n: (0, 0))
        else:
            g_spec = pl.BlockSpec((tn, De), lambda r, n: (n, 0))
        out = pl.pallas_call(
            functools.partial(_shared_online_kernel, beta, D, tn,
                              grid_resident),
            out_shape=jax.ShapeDtypeStruct((Rp, D), out_dtype),
            grid_spec=pltpu.PrefetchScalarGridSpec(
                num_scalar_prefetch=0,
                grid=(Rp // tr, n_steps),
                in_specs=[
                    pl.BlockSpec((tr, tn), lambda r, n: (r, n)),
                    g_spec,
                ],
                out_specs=pl.BlockSpec((tr, D), lambda r, n: (r, 0)),
                scratch_shapes=[
                    pltpu.VMEM((tr, 1), jnp.float32),    # running max m
                    pltpu.VMEM((tr, De), jnp.float32),   # numerator + denom
                ],
            ),
            compiler_params=pltpu.CompilerParams(
                dimension_semantics=("parallel", "arbitrary"),
                vmem_limit_bytes=vmem_limit),
            cost_estimate=cost,
        )(x_rows, g_ext)

    if Rp != R:
        out = out[:R]
    return out.reshape(B, C, D)


# ---------------------------------------------------------------------------
# General per-batch-grids path (exact PyTorch module signature).
# ---------------------------------------------------------------------------
def _batched_kernel(beta, d_out, x_ref, g_ref, o_ref):
    # x_ref: (bt, C, N)   g_ref: (bt, D+1, N) lane-dense   o_ref: (bt, C, D)
    x = x_ref[...].astype(jnp.float32) * jnp.float32(beta)
    m = jnp.max(x, axis=-1, keepdims=True)
    e = jnp.exp(x - m)
    acc = jnp.einsum("bcn,bdn->bcd", e, g_ref[...].astype(jnp.float32),
                     preferred_element_type=jnp.float32)     # (bt, C, D+1)
    inv = _finalize_reciprocal(acc[:, :, d_out:d_out + 1])
    o_ref[...] = (acc[:, :, :d_out] * inv).astype(o_ref.dtype)


def _soft_argmax_batched(x_flat, grids, beta, B, C, N, D, out_dtype):
    x_itemsize = jnp.dtype(x_flat.dtype).itemsize
    # grids (B, N, D) -> lane-dense (B, D+1, N) with a ones row: the softmax
    # denominator falls out of the contraction, and N sits on the 128 lanes
    # (avoids the (bt, N, D=2) 128-lane padding VMEM blowup flagged in review).
    g_ext = jnp.concatenate(
        [grids.astype(jnp.float32), jnp.ones((B, N, 1), jnp.float32)], axis=-1)
    g_ext = jnp.swapaxes(g_ext, 1, 2)                         # (B, D+1, N)
    De = D + 1

    # Batch tile: budget the *padded* VMEM footprint of x + grid + out blocks.
    Cp = _round_up(C, 8)
    Nl = _round_up(N, 128)
    per_b = Cp * Nl * x_itemsize + 8 * Nl * 4 + Cp * 128 * 4
    budget = 12 << 20
    bt = 1
    for cand in range(1, B + 1):
        if B % cand == 0 and cand * per_b <= budget:
            bt = cand
    # TODO(synk): for per-batch grids with very large N (3-D heatmaps) add an
    # N-tiled online-softmax variant like the shared-grid path; here the whole
    # (bt, C, N) slab must fit VMEM.

    vmem_limit = int(min(max(2 * bt * per_b * 5 // 4 + (2 << 20), 32 << 20),
                         48 << 20))
    cost = pl.CostEstimate(
        flops=2 * B * C * N * De,
        transcendentals=B * C * N,
        bytes_accessed=x_itemsize * B * C * N + 4 * (B * N * De + B * C * D))

    return pl.pallas_call(
        functools.partial(_batched_kernel, beta, D),
        out_shape=jax.ShapeDtypeStruct((B, C, D), out_dtype),
        grid_spec=pltpu.PrefetchScalarGridSpec(
            num_scalar_prefetch=0,
            grid=(B // bt,),
            in_specs=[
                pl.BlockSpec((bt, C, N), lambda b: (b, 0, 0)),
                pl.BlockSpec((bt, De, N), lambda b: (b, 0, 0)),
            ],
            out_specs=pl.BlockSpec((bt, C, D), lambda b: (b, 0, 0)),
        ),
        compiler_params=pltpu.CompilerParams(
            dimension_semantics=("parallel",),
            vmem_limit_bytes=vmem_limit),
        cost_estimate=cost,
    )(x_flat, g_ext)


# ---------------------------------------------------------------------------
# Public wrapper
# ---------------------------------------------------------------------------
def soft_argmax(x: jax.Array, grids: jax.Array, beta: float,
                *, out_dtype=jnp.float32, n_tile_target=None) -> jax.Array:
    """SoftArgmaxLayer forward (beta > 0 assumed, as in the pose net).

    x:     (B, C, *spatial)   -- pass bf16 heatmaps when possible (HBM-bound)
    grids: (N, D)             -> batch-shared-grid fast path, or
           (B, N, D)          -> per-batch grids (general PyTorch semantics)
    Returns (B, C, D) coordinates (f32 by default; they are tiny and precision
    matters for regression).
    """
    B, C = x.shape[0], x.shape[1]
    N = 1
    for s in x.shape[2:]:
        N *= s
    D = grids.shape[-1]

    if grids.ndim == 2:
        assert grids.shape == (N, D), grids.shape
        return _soft_argmax_shared(x.reshape(B * C, N), grids, beta,
                                   B, C, N, D, out_dtype, n_tile_target)
    assert grids.shape == (B, N, D), grids.shape
    return _soft_argmax_batched(x.reshape(B, C, N), grids, beta,
                                B, C, N, D, out_dtype)


def soft_argmax_ref(x, grids, beta):
    B, C = x.shape[0], x.shape[1]
    xf = x.reshape(B, C, -1).astype(jnp.float32)
    p = jax.nn.softmax(beta * xf, axis=2)                    # (B, C, N)
    return jnp.einsum("bcn,bnd->bcd", p, grids.astype(jnp.float32),
                      precision="highest")


if __name__ == "__main__":
    BETA = 100.0   # cfg.NETWORK.BETA — deterministic, set in-script.

    key = jax.random.PRNGKey(0)
    kx, kx2, kx3 = jax.random.split(key, 3)

    def _check(out, ref, name, atol=1e-5):
        err = float(jnp.max(jnp.abs(out - ref)))
        assert out.shape == ref.shape, (name, out.shape, ref.shape)
        assert err <= atol, f"{name}: max abs err = {err}"

    # ---- Case 1: typical 2-D heatmap, shared grid --------------------------
    B, C, H, W, D = 2, 4, 16, 16, 2
    N = H * W
    x = jax.random.normal(kx, (B, C, H, W), dtype=jnp.float32)
    ys, xs = jnp.meshgrid(jnp.arange(H, dtype=jnp.float32),
                          jnp.arange(W, dtype=jnp.float32), indexing="ij")
    grid_single = jnp.stack([xs / (W - 1), ys / (H - 1)], axis=-1).reshape(N, D)
    grids_batched = jnp.broadcast_to(grid_single[None], (B, N, D))
    ref = soft_argmax_ref(x, grids_batched, BETA)

    # single-tile fast path (f32 input)
    out = jax.block_until_ready(soft_argmax(x, grid_single, BETA))
    _check(out, ref, "shared/single-tile")

    # bf16 heatmaps (recommended input dtype — halves HBM traffic)
    x_bf16 = x.astype(jnp.bfloat16)
    out_bf16 = jax.block_until_ready(soft_argmax(x_bf16, grid_single, BETA))
    ref_bf16 = soft_argmax_ref(x_bf16.astype(jnp.float32), grids_batched, BETA)
    _check(out_bf16, ref_bf16, "shared/bf16", atol=1e-4)

    # force the multi-tile online-softmax path
    out_on = jax.block_until_ready(
        soft_argmax(x, grid_single, BETA, n_tile_target=128))
    _check(out_on, ref, "shared/online")

    # ---- Case 2: awkward spatial size -> padding paths ---------------------
    B2, C2, H2, W2 = 2, 3, 15, 9
    N2 = H2 * W2
    x2 = jax.random.normal(kx2, (B2, C2, H2, W2), dtype=jnp.float32)
    grid2 = jax.random.uniform(jax.random.PRNGKey(1), (N2, D), jnp.float32)
    ref2 = soft_argmax_ref(x2, jnp.broadcast_to(grid2[None], (B2, N2, D)), BETA)
    out2a = jax.block_until_ready(soft_argmax(x2, grid2, BETA))
    _check(out2a, ref2, "shared/padded-single")
    out2b = jax.block_until_ready(
        soft_argmax(x2, grid2, BETA, n_tile_target=128))
    _check(out2b, ref2, "shared/padded-online")

    # ---- Case 3: large-ish N -> streamed (non-resident) grid blocks --------
    B3, C3, H3, W3 = 2, 4, 65, 128
    N3 = H3 * W3
    x3 = jax.random.normal(kx3, (B3, C3, H3, W3), dtype=jnp.float32)
    grid3 = jax.random.uniform(jax.random.PRNGKey(2), (N3, D), jnp.float32)
    ref3 = soft_argmax_ref(x3, jnp.broadcast_to(grid3[None], (B3, N3, D)), BETA)
    out3 = jax.block_until_ready(soft_argmax(x3, grid3, BETA))
    _check(out3, ref3, "shared/streamed-grid")

    # ---- Case 4: per-batch grids (exact PyTorch module signature) ----------
    out_b = jax.block_until_ready(soft_argmax(x, grids_batched, BETA))
    _check(out_b, ref, "batched")

    print("KERNEL_OK")
</pallas_src>

<mosaic_0001>
module attributes {stable_mosaic.version = 11 : i64} {
  func.func @_shared_single_kernel(%arg0: i32, %arg1: memref<8x256xf32, #tpu.memory_space<vmem>>, %arg2: memref<256x3xf32, #tpu.memory_space<vmem>>, %arg3: memref<8x2xf32, #tpu.memory_space<vmem>>) attributes {dimension_semantics = [#tpu.dimension_semantics<parallel>], iteration_bounds = array<i64: 1>, scalar_prefetch = 0 : i64, scratch_operands = 0 : i64, tpu.core_type = #tpu.core_type<tc>, window_params = [{transform_indices = @transform_0, window_bounds = array<i64: 8, 256>}, {pipeline_mode = #tpu.pipeline_mode<synchronous>, transform_indices = @transform_1, window_bounds = array<i64: 256, 3>}, {transform_indices = @transform_2, window_bounds = array<i64: 8, 2>}]} {
    %c0 = arith.constant 0 : index
    %c0_0 = arith.constant 0 : index
    %0 = vector.load %arg1[%c0, %c0_0] : memref<8x256xf32, #tpu.memory_space<vmem>>, vector<8x256xf32>
    %cst = arith.constant 1.000000e+02 : f32
    %1 = vector.broadcast %cst : f32 to vector<8x256xf32>
    %2 = arith.mulf %0, %1 : vector<8x256xf32>
    %cst_1 = arith.constant dense<0xFF800000> : vector<8xf32>
    %3 = vector.multi_reduction <maximumf>, %2, %cst_1 [1] : vector<8x256xf32> to vector<8xf32>
    %4 = vector.shape_cast %3 : vector<8xf32> to vector<8x1xf32>
    %5 = vector.broadcast %4 : vector<8x1xf32> to vector<8x256xf32>
    %6 = arith.subf %2, %5 : vector<8x256xf32>
    %7 = math.exp %6 : vector<8x256xf32>
    %c0_2 = arith.constant 0 : index
    %c0_3 = arith.constant 0 : index
    %8 = vector.load %arg2[%c0_2, %c0_3] : memref<256x3xf32, #tpu.memory_space<vmem>>, vector<256x3xf32>
    %cst_4 = arith.constant dense<0.000000e+00> : vector<8x3xf32>
    %9 = tpu.matmul %7, %8, %cst_4 {dimension_numbers = #tpu.dot_dimension_numbers<[1], [0], [0], [1], [0, 0, 1, 1], [], []>} : vector<8x256xf32>, vector<256x3xf32>, vector<8x3xf32> -> vector<8x3xf32>
    %10 = vector.extract_strided_slice %9 {offsets = [0, 2], sizes = [8, 1], strides = [1, 1]} : vector<8x3xf32> to vector<8x1xf32>
    %11 = tpu.reciprocal %10 {approx = true} : vector<8x1xf32> -> vector<8x1xf32>
    %12 = arith.mulf %10, %11 : vector<8x1xf32>
    %cst_5 = arith.constant 2.000000e+00 : f32
    %13 = vector.broadcast %cst_5 : f32 to vector<8x1xf32>
    %14 = arith.subf %13, %12 : vector<8x1xf32>
    %15 = arith.mulf %11, %14 : vector<8x1xf32>
    %16 = vector.extract_strided_slice %9 {offsets = [0, 0], sizes = [8, 2], strides = [1, 1]} : vector<8x3xf32> to vector<8x2xf32>
    %17 = vector.broadcast %15 : vector<8x1xf32> to vector<8x2xf32>
    %18 = arith.mulf %16, %17 : vector<8x2xf32>
    %c0_6 = arith.constant 0 : index
    %c0_7 = arith.constant 0 : index
    %19 = vector.load %arg3[%c0_6, %c0_7] : memref<8x2xf32, #tpu.memory_space<vmem>>, vector<8x2xf32>
    tpu.vector_store %arg3[%c0_6, %c0_7], %18 {strides = array<i32>} : memref<8x2xf32, #tpu.memory_space<vmem>>, vector<8x2xf32>,
    return
  }
  func.func @transform_0(%arg0: i32) -> (i32, i32) {
    %c0_i32 = arith.constant 0 : i32
    %c0_i32_0 = arith.constant 0 : i32
    return %arg0, %c0_i32 : i32, i32
  }
  func.func @transform_1(%arg0: i32) -> (i32, i32) {
    %c0_i32 = arith.constant 0 : i32
    %c0_i32_0 = arith.constant 0 : i32
    %c0_i32_1 = arith.constant 0 : i32
    return %c0_i32, %c0_i32_0 : i32, i32
  }
  func.func @transform_2(%arg0: i32) -> (i32, i32) {
    %c0_i32 = arith.constant 0 : i32
    %c0_i32_0 = arith.constant 0 : i32
    return %arg0, %c0_i32 : i32, i32
  }
}

</mosaic_0001>

<bundles_post_ra>
// kernel: tpu_custom_call.1
= control target key start
LH: loop header
LB: loop body
LE: loop exit
PB: predicated region body
PF: predicated region fallthrough
CT: control target
= control target key end

     0   :  { %v217_v60 = vmov 2   ;;  %vm136_vm0 = vcmask 15360   ;;  %s346_s0 = inlined_call_operand.vmem [shape: f32[8,256], index: 0, kind: input, shape index: {}]   ;;  %s347_s1 = inlined_call_operand.vmem [shape: f32[256,3], index: 1, kind: input, shape index: {}]   ;;  %s348_s2 = inlined_call_operand.vmem [shape: f32[8,2], index: 2, kind: output, shape index: {}]  }
   0x1   :  { %v11_v0 = vld [vmem:[%s346_s0] sm:$0xff]  ;;  %v12_v1 = vld [vmem:[%s346_s0 + $0x8] sm:$0xff]  ;;  %v42_v10 = vld [vmem:[%s347_s1 + $0x90] sm:$0xff]  ;;  %210 = vset.pattern.permute.xlu0 %v217_v60 }
   0x2   :  { %v40_v2 = vld [vmem:[%s347_s1 + $0x80] sm:$0xff]  ;;  %v242_v3 = vmul.f32 100.0, %v11_v0  ;;  %v244_v4 = vmul.f32 100.0, %v12_v1  ;;  %v41_v5 = vld [vmem:[%s347_s1 + $0x88] sm:$0xff]  ;;  %v43_v11 = vld [vmem:[%s347_s1 + $0x98] sm:$0xff] }
   0x3   :  { %v24_v6 = vld [vmem:[%s347_s1] sm:$0xff]  ;;  %v25_v7 = vld [vmem:[%s347_s1 + $0x8] sm:$0xff]  ;;  %v177_v8 = vpack.c.bf16 %v41_v5, %v40_v2  ;;  %v26_v12 = vld [vmem:[%s347_s1 + $0x10] sm:$0xff]  ;;  %v181_v14 = vpack.c.bf16 %v43_v11, %v42_v10 }
   0x4   :  { %v179_v9 = vpack.c.bf16 %v25_v7, %v24_v6  ;;  %v15_v13 = vmax.f32 %v242_v3, %v244_v4  ;;  %v27_v15 = vld [vmem:[%s347_s1 + $0x18] sm:$0xff]  ;;  %v44_v16 = vld [vmem:[%s347_s1 + $0xa0] sm:$0xff]  ;;  %v45_v17 = vld [vmem:[%s347_s1 + $0xa8] sm:$0xff] }
   0x5   :  { %178 = vmatprep.subr.bf16.mxu0 %v177_v8  ;;  %v183_v18 = vpack.c.bf16 %v27_v15, %v26_v12  ;;  %v185_v19 = vpack.c.bf16 %v45_v17, %v44_v16  ;;  %v28_v20 = vld [vmem:[%s347_s1 + $0x20] sm:$0xff]  ;;  %v29_v21 = vld [vmem:[%s347_s1 + $0x28] sm:$0xff]  ;;  %v46_v22 = vld [vmem:[%s347_s1 + $0xb0] sm:$0xff] }
   0x6   :  { %16 = vmax.xlane.f32.xlu0 %v15_v13  ;;  %180 = vmatpush3.bf16.msra.mxu0 %v179_v9  ;;  %v47_v23 = vld [vmem:[%s347_s1 + $0xb8] sm:$0xff]  ;;  %v187_v24 = vpack.c.bf16 %v29_v21, %v28_v20  ;;  %v30_v26 = vld [vmem:[%s347_s1 + $0x30] sm:$0xff]  ;;  %v48_v29 = vld [vmem:[%s347_s1 + $0xc0] sm:$0xff] }
   0x7   :  { %182 = vmatprep.subr.bf16.mxu0 %v181_v14  ;;  %v189_v25 = vpack.c.bf16 %v47_v23, %v46_v22  ;;  %v31_v27 = vld [vmem:[%s347_s1 + $0x38] sm:$0xff]  ;;  %v49_v30 = vld [vmem:[%s347_s1 + $0xc8] sm:$0xff]  ;;  %v32_v32 = vld [vmem:[%s347_s1 + $0x40] sm:$0xff] }
   0x8   :  { %v191_v28 = vpack.c.bf16 %v31_v27, %v30_v26  ;;  %v193_v31 = vpack.c.bf16 %v49_v30, %v48_v29  ;;  %v33_v33 = vld [vmem:[%s347_s1 + $0x48] sm:$0xff]  ;;  %v50_v35 = vld [vmem:[%s347_s1 + $0xd0] sm:$0xff]  ;;  %v51_v36 = vld [vmem:[%s347_s1 + $0xd8] sm:$0xff] }
   0x9   :  { %v195_v34 = vpack.c.bf16 %v33_v33, %v32_v32  ;;  %v197_v37 = vpack.c.bf16 %v51_v36, %v50_v35  ;;  %v34_v38 = vld [vmem:[%s347_s1 + $0x50] sm:$0xff]  ;;  %v35_v39 = vld [vmem:[%s347_s1 + $0x58] sm:$0xff]  ;;  %v52_v41 = vld [vmem:[%s347_s1 + $0xe0] sm:$0xff] }
   0xa   :  { %184 = vmatpush3.bf16.msra.mxu0 %v183_v18  ;;  %v199_v40 = vpack.c.bf16 %v35_v39, %v34_v38  ;;  %v53_v42 = vld [vmem:[%s347_s1 + $0xe8] sm:$0xff]  ;;  %v36_v43 = vld [vmem:[%s347_s1 + $0x60] sm:$0xff]  ;;  %v54_v46 = vld [vmem:[%s347_s1 + $0xf0] sm:$0xff] }
   0xb   :  { %186 = vmatprep.subr.bf16.mxu0 %v185_v19  ;;  %v201_v44 = vpack.c.bf16 %v53_v42, %v52_v41  ;;  %v37_v45 = vld [vmem:[%s347_s1 + $0x68] sm:$0xff]  ;;  %v55_v47 = vld [vmem:[%s347_s1 + $0xf8] sm:$0xff]  ;;  %v38_v50 = vld [vmem:[%s347_s1 + $0x70] sm:$0xff] }
   0xc   :  { %v203_v48 = vpack.c.bf16 %v37_v45, %v36_v43  ;;  %v205_v49 = vpack.c.bf16 %v55_v47, %v54_v46  ;;  %v39_v51 = vld [vmem:[%s347_s1 + $0x78] sm:$0xff] }
   0xd   :  { %v207_v52 = vpack.c.bf16 %v39_v51, %v38_v50 }
   0xe   :  { %188 = vmatpush3.bf16.msra.mxu0 %v187_v24 }
   0xf   :  { %190 = vmatprep.subr.bf16.mxu0 %v189_v25 }
  0x12   :  { %192 = vmatpush3.bf16.msra.mxu0 %v191_v28 }
  0x13   :  { %194 = vmatprep.subr.bf16.mxu0 %v193_v31 }
  0x16   :  { %196 = vmatpush3.bf16.msra.mxu0 %v195_v34 }
  0x17   :  { %198 = vmatprep.subr.bf16.mxu0 %v197_v37 }
  0x1a   :  { %200 = vmatpush3.bf16.msra.mxu0 %v199_v40 }
  0x1b   :  { %202 = vmatprep.subr.bf16.mxu0 %v201_v44 }
  0x1e   :  { %204 = vmatpush3.bf16.msra.mxu0 %v203_v48 }
  0x1f   :  { %206 = vmatprep.subr.bf16.mxu0 %v205_v49 }
  0x22   :  { %208 = vmatpush3.bf16.msra.mxu0 %v207_v52 }
  0x93   :  { %v17_v53 = vpop.xlane.xlu0 %16 }
  0x94   :  { %v18_v54 = vsub.f32 %v242_v3, %v17_v53  ;;  %v19_v55 = vsub.f32 %v244_v4, %v17_v53 }
  0x96   :  { %v20_v56 = vmul.f32 1.442695, %v18_v54  ;;  %v22_v57 = vmul.f32 1.442695, %v19_v55 }
  0x98   :  { %211 = vpow2.f32 %v20_v56 }
  0x99   :  { %213 = vpow2.f32 %v22_v57 }
  0xa2   :  { %v212_v58 = vpop.eup %211 }
  0xa3   :  { %v214_v59 = vpop.eup %213 }
  0xa4   :  { %120 = vmatprep.mubr.f32.mxu0 %v214_v59 }
  0xa5   :  { %121 = vmatmul.mubr.f32.vlgmr.msra.gmra.mrb[0].mxu0 %v212_v58 }
 0x178   :  { %v174_v61 = vpop.f32.mrb[0].mxu0 }
 0x179   :  { %v175_v62 = vpop.f32.mrb[1].mxu0 }
 0x17a   :  { %v176_v63 = vadd.f32 %v175_v62, %v174_v61 }
 0x17c   :  { %215 = vrcp.f32 %v176_v63 }
 0x186   :  { %v216_v0 = vpop.eup %215 }
 0x187   :  { %v127_v1 = vmul.f32 %v216_v0, %v176_v63 }
 0x189   :  { %v128_v2 = vsub.f32 2.0, %v127_v1 }
 0x18b   :  { %v129_v3 = vmul.f32 %v216_v0, %v128_v2 }
 0x18d   :  { %132 = vperm.xlu0 %210, %v129_v3  }
 0x20c   :  { %v133_v4 = vpop.permute.xlu0 %132 }
 0x20d   :  { %v135_v5 = vmul.f32 %v176_v63, %v133_v4 }
 0x20f   :  { %137 = vst.msk [vmem:[%s348_s2] sm:$0xff] %vm136_vm0, %v135_v5 }

</bundles_post_ra>
